<compile_context>
chip_gen: v5e
topology: v5e:2x2
jax: 0.10.0
libtpu: 0.0.40
codegen_flags: <defaults>
</compile_context>

<pallas_src>
import math

import jax
import jax.numpy as jnp
from jax import lax
from jax.experimental import pallas as pl
from jax.experimental.pallas import tpu as pltpu


def _round_up(a: int, b: int) -> int:
    return -(-a // b) * b


def _linear_kernel(x_ref, w_ref, o_ref):
    # x_ref: (TM, K)  w_ref: (N_pad, K)  o_ref: (TM, N_pad)
    # Contract on the last dim of both operands (== trans_b matmul) so the MXU
    # gets W in its stored layout; accumulate in f32.
    o_ref[...] = lax.dot_general(
        x_ref[...],
        w_ref[...],
        dimension_numbers=(((1,), (1,)), ((), ())),
        preferred_element_type=jnp.float32,
    ).astype(o_ref.dtype)


def _pallas_linear_2d(x2d: jax.Array, weight: jax.Array, *, block_m: int = 512) -> jax.Array:
    """o = x2d @ weight.T via an M-tiled Pallas kernel (weight VMEM-resident)."""
    M, K = x2d.shape
    N, K2 = weight.shape
    assert K == K2, f"input_size mismatch: {K} vs {K2}"
    if M == 0:
        return jnp.zeros((0, N), dtype=x2d.dtype)

    # Lane-dense output: pad the output feature dim to a multiple of 128.
    n_pad = _round_up(N, 128)
    if n_pad != N:
        weight = jnp.pad(weight, ((0, n_pad - N), (0, 0)))

    # M tiling: tile of `block_m` rows for large M, otherwise one sublane-aligned tile.
    tm = min(block_m, _round_up(M, 8))
    m_pad = _round_up(M, tm)
    if m_pad != M:
        x2d = jnp.pad(x2d, ((0, m_pad - M), (0, 0)))

    grid = (m_pad // tm,)
    out = pl.pallas_call(
        _linear_kernel,
        out_shape=jax.ShapeDtypeStruct((m_pad, n_pad), x2d.dtype),
        grid_spec=pltpu.PrefetchScalarGridSpec(
            num_scalar_prefetch=0,
            grid=grid,
            in_specs=[
                # x: one (tm, K) tile per grid step (K kept whole; it equals the
                # full array dim, so the (8,128) constraint does not apply).
                pl.BlockSpec((tm, K), lambda i: (i, 0)),
                # weight: same block for every step -> stays resident in VMEM.
                pl.BlockSpec((n_pad, K), lambda i: (0, 0)),
            ],
            out_specs=pl.BlockSpec((tm, n_pad), lambda i: (i, 0)),
        ),
        compiler_params=pltpu.CompilerParams(
            # M tiles are independent -> megacore sharding on v7x.
            dimension_semantics=("parallel",),
            vmem_limit_bytes=32 * 1024 * 1024,
        ),
    )(x2d, weight)
    return out[:M, :N]


class LinearEmbedding:
    """JAX/Pallas port of the PyTorch LinearEmbedding module.

    forward(x) == encode(x) == x @ weight.T          (primary module, is_inverse=False)
    decode(y)  == y @ weight_pinv.T                  (pseudo-inverse path)
    """

    def __init__(self, input_size: int, output_size: int, key: jax.Array):
        self.input_size = input_size
        self.output_size = output_size
        # reset_parameters(): uniform(-1/sqrt(input_size), +1/sqrt(input_size))
        bound = 1.0 / math.sqrt(input_size)
        self.weight = jax.random.uniform(
            key, (output_size, input_size), dtype=jnp.float32,
            minval=-bound, maxval=bound,
        )
        # buffer weight_pinv (input_size, output_size); recompute_pinv():
        # TODO(synk): pinverse (SVD) has no Pallas equivalent; computed with XLA glue.
        self.weight_pinv = jnp.linalg.pinv(self.weight)

    def recompute_pinv(self) -> None:
        self.weight_pinv = jnp.linalg.pinv(self.weight)

    def _apply(self, x: jax.Array, w: jax.Array) -> jax.Array:
        # Flatten leading batch dims (functional.linear broadcasting), run the
        # tiled kernel, then unflatten.
        # NOTE: at toy sizes a plain XLA dot would beat the custom kernel; the
        # Pallas path pays off at realistic flattened-batch / feature sizes.
        lead = x.shape[:-1]
        x2d = x.reshape((-1, x.shape[-1]))
        o2d = _pallas_linear_2d(x2d, w)
        return o2d.reshape(lead + (w.shape[0],))

    def forward(self, x: jax.Array) -> jax.Array:
        # Primary module: is_inverse == False -> _encode
        return self._apply(x, self.weight)

    encode = forward

    def decode(self, y: jax.Array) -> jax.Array:
        return self._apply(y, self.weight_pinv)


if __name__ == "__main__":
    key = jax.random.PRNGKey(0)
    k_w, k_x = jax.random.split(key)

    input_size, output_size = 32, 64
    batch, seq = 2, 8

    module = LinearEmbedding(input_size, output_size, k_w)

    x = jax.random.normal(k_x, (batch, seq, input_size), dtype=jnp.float32)

    y = module.forward(x)
    y = jax.block_until_ready(y)

    # Correctness vs. plain-JAX reference of functional.linear semantics.
    y_ref = jnp.einsum("bsi,oi->bso", x, module.weight)
    assert y.shape == (batch, seq, output_size)
    assert jnp.allclose(y, y_ref, atol=1e-5, rtol=1e-5)

    # Decode (pseudo-inverse) path through the same kernel.
    x_rec = jax.block_until_ready(module.decode(y))
    x_rec_ref = jnp.einsum("bso,io->bsi", y, module.weight_pinv)
    assert x_rec.shape == (batch, seq, input_size)
    assert jnp.allclose(x_rec, x_rec_ref, atol=1e-5, rtol=1e-5)

    print("KERNEL_OK")
</pallas_src>

<mosaic_0001>
module attributes {stable_mosaic.version = 11 : i64} {
  func.func @_linear_kernel(%arg0: i32, %arg1: memref<16x32xf32, #tpu.memory_space<vmem>>, %arg2: memref<128x32xf32, #tpu.memory_space<vmem>>, %arg3: memref<16x128xf32, #tpu.memory_space<vmem>>) attributes {dimension_semantics = [#tpu.dimension_semantics<parallel>], iteration_bounds = array<i64: 1>, scalar_prefetch = 0 : i64, scratch_operands = 0 : i64, tpu.core_type = #tpu.core_type<tc>, window_params = [{transform_indices = @transform_0, window_bounds = array<i64: 16, 32>}, {pipeline_mode = #tpu.pipeline_mode<synchronous>, transform_indices = @transform_1, window_bounds = array<i64: 128, 32>}, {transform_indices = @transform_2, window_bounds = array<i64: 16, 128>}]} {
    %c0 = arith.constant 0 : index
    %c0_0 = arith.constant 0 : index
    %0 = vector.load %arg1[%c0, %c0_0] : memref<16x32xf32, #tpu.memory_space<vmem>>, vector<16x32xf32>
    %c0_1 = arith.constant 0 : index
    %c0_2 = arith.constant 0 : index
    %1 = vector.load %arg2[%c0_1, %c0_2] : memref<128x32xf32, #tpu.memory_space<vmem>>, vector<128x32xf32>
    %cst = arith.constant dense<0.000000e+00> : vector<16x128xf32>
    %2 = tpu.matmul %0, %1, %cst {dimension_numbers = #tpu.dot_dimension_numbers<[1], [1], [0], [0], [0, 0, 1, 0], [], []>} : vector<16x32xf32>, vector<128x32xf32>, vector<16x128xf32> -> vector<16x128xf32>
    %c0_3 = arith.constant 0 : index
    %c0_4 = arith.constant 0 : index
    %3 = vector.load %arg3[%c0_3, %c0_4] : memref<16x128xf32, #tpu.memory_space<vmem>>, vector<16x128xf32>
    tpu.vector_store %arg3[%c0_3, %c0_4], %2 {strides = array<i32>} : memref<16x128xf32, #tpu.memory_space<vmem>>, vector<16x128xf32>,
    return
  }
  func.func @transform_0(%arg0: i32) -> (i32, i32) {
    %c0_i32 = arith.constant 0 : i32
    %c0_i32_0 = arith.constant 0 : i32
    return %arg0, %c0_i32 : i32, i32
  }
  func.func @transform_1(%arg0: i32) -> (i32, i32) {
    %c0_i32 = arith.constant 0 : i32
    %c0_i32_0 = arith.constant 0 : i32
    %c0_i32_1 = arith.constant 0 : i32
    return %c0_i32, %c0_i32_0 : i32, i32
  }
  func.func @transform_2(%arg0: i32) -> (i32, i32) {
    %c0_i32 = arith.constant 0 : i32
    %c0_i32_0 = arith.constant 0 : i32
    return %arg0, %c0_i32 : i32, i32
  }
}

</mosaic_0001>

<bundles_post_ra>
// kernel: tpu_custom_call.1
= control target key start
LH: loop header
LB: loop body
LE: loop exit
PB: predicated region body
PF: predicated region fallthrough
CT: control target
= control target key end

     0   :  { %vm30_vm0 = vcmask 261120   ;;  %s300_s0 = inlined_call_operand.vmem [shape: f32[16,32], index: 0, kind: input, shape index: {}]   ;;  %s301_s1 = inlined_call_operand.vmem [shape: f32[128,32], index: 1, kind: input, shape index: {}]   ;;  %s302_s2 = inlined_call_operand.hbm [shape: f32[16,128], index: 2, kind: output, shape index: {}]  }
   0x1   :  { %v29_v0 = vld [vmem:[%s301_s1 + $0x78] sm:$0xff]  ;;  %v28_v1 = vld [vmem:[%s301_s1 + $0x70] sm:$0xff] }
   0x2   :  { %128 = vmatpush.xpose.msk.msra.mxu0 %vm30_vm0, %v29_v0  ;;  %146 = vmatpush.xpose.msk.msra.mxu1 %vm30_vm0, %v29_v0 }
   0x3   :  { %7 = vsyncpa [#allocation3], 0  ;;  %v27_v2 = vld [vmem:[%s301_s1 + $0x68] sm:$0xff]  ;;  %v26_v3 = vld [vmem:[%s301_s1 + $0x60] sm:$0xff]  ;;  %s191_s17 = smov [#allocation2]   ;;  %s116_s20 = sshll.u32 %s302_s2, 4  ;;  %s117_s20 = int_to_ptr.hbm [resolvable:$true] %s116_s20 }
   0x4   :  { %v25_v4 = vld [vmem:[%s301_s1 + $0x58] sm:$0xff]  ;;  %v24_v5 = vld [vmem:[%s301_s1 + $0x50] sm:$0xff]  ;;  %v23_v6 = vld [vmem:[%s301_s1 + $0x48] sm:$0xff]  ;;  %s114_s18 = sshll.u32 %s191_s17, 4  ;;  %s192_s21 = smov 128   ;;  %s115_s18 = int_to_ptr.vmem [resolvable:$true] %s114_s18 }
   0x5   :  { %v22_v7 = vld [vmem:[%s301_s1 + $0x40] sm:$0xff]  ;;  %v21_v8 = vld [vmem:[%s301_s1 + $0x38] sm:$0xff]  ;;  %v20_v9 = vld [vmem:[%s301_s1 + $0x30] sm:$0xff]  ;;  %s193_s22 = smov 8  }
   0x6   :  { %129 = vmatpush.xpose.msk.msra.mxu0 %vm30_vm0, %v28_v1  ;;  %147 = vmatpush.xpose.msk.msra.mxu1 %vm30_vm0, %v28_v1  ;;  %v19_v10 = vld [vmem:[%s301_s1 + $0x28] sm:$0xff]  ;;  %v18_v11 = vld [vmem:[%s301_s1 + $0x20] sm:$0xff]  ;;  %v17_v12 = vld [vmem:[%s301_s1 + $0x18] sm:$0xff] }
   0x7   :  { %v16_v13 = vld [vmem:[%s301_s1 + $0x10] sm:$0xff]  ;;  %v15_v14 = vld [vmem:[%s301_s1 + $0x8] sm:$0xff]  ;;  %v14_v15 = vld [vmem:[%s301_s1] sm:$0xff] }
   0x8   :  { %v12_v16 = vld [vmem:[%s300_s0] sm:$0xff]  ;;  %v13_v17 = vld [vmem:[%s300_s0 + $0x8] sm:$0xff] }
   0xa   :  { %130 = vmatpush.xpose.msk.msra.mxu0 %vm30_vm0, %v27_v2  ;;  %148 = vmatpush.xpose.msk.msra.mxu1 %vm30_vm0, %v27_v2 }
   0xe   :  { %131 = vmatpush.xpose.msk.msra.mxu0 %vm30_vm0, %v26_v3  ;;  %149 = vmatpush.xpose.msk.msra.mxu1 %vm30_vm0, %v26_v3 }
  0x12   :  { %132 = vmatpush.xpose.msk.msra.mxu0 %vm30_vm0, %v25_v4  ;;  %150 = vmatpush.xpose.msk.msra.mxu1 %vm30_vm0, %v25_v4 }
  0x16   :  { %133 = vmatpush.xpose.msk.msra.mxu0 %vm30_vm0, %v24_v5  ;;  %151 = vmatpush.xpose.msk.msra.mxu1 %vm30_vm0, %v24_v5 }
  0x1a   :  { %134 = vmatpush.xpose.msk.msra.mxu0 %vm30_vm0, %v23_v6  ;;  %152 = vmatpush.xpose.msk.msra.mxu1 %vm30_vm0, %v23_v6 }
  0x1e   :  { %135 = vmatpush.xpose.msk.msra.mxu0 %vm30_vm0, %v22_v7  ;;  %153 = vmatpush.xpose.msk.msra.mxu1 %vm30_vm0, %v22_v7 }
  0x22   :  { %136 = vmatpush.xpose.msk.msra.mxu0 %vm30_vm0, %v21_v8  ;;  %154 = vmatpush.xpose.msk.msra.mxu1 %vm30_vm0, %v21_v8 }
  0x26   :  { %137 = vmatpush.xpose.msk.msra.mxu0 %vm30_vm0, %v20_v9  ;;  %155 = vmatpush.xpose.msk.msra.mxu1 %vm30_vm0, %v20_v9 }
  0x2a   :  { %138 = vmatpush.xpose.msk.msra.mxu0 %vm30_vm0, %v19_v10  ;;  %156 = vmatpush.xpose.msk.msra.mxu1 %vm30_vm0, %v19_v10 }
  0x2e   :  { %139 = vmatpush.xpose.msk.msra.mxu0 %vm30_vm0, %v18_v11  ;;  %157 = vmatpush.xpose.msk.msra.mxu1 %vm30_vm0, %v18_v11 }
  0x32   :  { %140 = vmatpush.xpose.msk.msra.mxu0 %vm30_vm0, %v17_v12  ;;  %158 = vmatpush.xpose.msk.msra.mxu1 %vm30_vm0, %v17_v12 }
  0x36   :  { %141 = vmatpush.xpose.msk.msra.mxu0 %vm30_vm0, %v16_v13  ;;  %159 = vmatpush.xpose.msk.msra.mxu1 %vm30_vm0, %v16_v13 }
  0x3a   :  { %142 = vmatpush.xpose.msk.msra.mxu0 %vm30_vm0, %v15_v14  ;;  %160 = vmatpush.xpose.msk.msra.mxu1 %vm30_vm0, %v15_v14 }
  0x3e   :  { %143 = vmatpush.xpose.msk.msra.mxu0 %vm30_vm0, %v14_v15  ;;  %161 = vmatpush.xpose.msk.msra.mxu1 %vm30_vm0, %v14_v15 }
  0x41   :  { %144 = vmatmul.msk.f32.vlgmr.msra.gmra.mxu0 %vm30_vm0, %v12_v16  ;;  %145 = vmatmul.msk.f32.vlgmr.msra.gmra.mxu1 %vm30_vm0, %v13_v17 }
  0xbe   :  { %v102_v18 = vpop.f32.mrf.mxu0  ;;  %v105_v19 = vpop.f32.mrf.mxu1 }
  0xbf   :  { %108 = vst [vmem:[#allocation2] sm:$0xff] %v102_v18 }
  0xc0   :  { %109 = vst [vmem:[#allocation2 + $0x8] sm:$0xff] %v105_v19 }
  0xc1   :  { %122 = dma.vmem_to_hbm [thread:$0]  %s115_s18, 256, %s117_s20, [#allocation3], %s192_s21, %s192_s21, %s193_s22  }
  0xc2   :  { %189 = dma.done.wait [#allocation3], 256  }
  0xc3   :  { %190 = vsyncadd [#allocation3], 4294967040 }
  0xc4   :  { %127 = vsyncpa [#allocation3], 1 }

</bundles_post_ra>
